<compile_context>
chip_gen: v7x
topology: tpu7x:2x2x1
jax: 0.10.0
libtpu: 0.0.40
codegen_flags: <defaults>
</compile_context>

<pallas_src>
from functools import partial

import jax
import jax.numpy as jnp
from jax.experimental import pallas as pl
from jax.experimental.pallas import tpu as pltpu


def _round_up(x, m):
    return ((x + m - 1) // m) * m


def _cdiv(a, b):
    return (a + b - 1) // b


# ------------------------------ Pallas kernel --------------------------------
def _hca_mlp_kernel(x_ref, w_ref, b_ref, out_ref, *, DP, HP, A):
    """One batch tile of the HCA MLP head.

    x_ref  : [TB, DP] bf16  concat([states, returns]) zero-padded to DP feats
    w_ref  : [DP+2*HP, HP] bf16 packed weights:
               rows [0:DP)          -> W1 (valid [D, H],  zero padded)
               rows [DP:DP+HP)      -> W2 (valid [H, H],  zero padded)
               rows [DP+HP:DP+2*HP) -> W3 (valid [H, A],  zero padded)
    b_ref  : [3, HP] f32  b1, b2, b3 (b3 padded lanes = -1e30 -> exact lse)
    out_ref: [TB, HP] f32  lanes [0:A) = log_probs, lane A = logsumexp,
             remaining lanes = junk.  logits = log_probs + lse (wrapper).
    """
    x = x_ref[...]                                            # [TB, DP] bf16

    w1 = w_ref[0:DP, :]                                       # [DP, HP] bf16
    w2 = w_ref[DP:DP + HP, :]                                 # [HP, HP] bf16
    w3 = w_ref[DP + HP:DP + 2 * HP, :]                        # [HP, HP] bf16

    b1 = b_ref[0:1, :]                                        # [1, HP] f32
    b2 = b_ref[1:2, :]
    b3 = b_ref[2:3, :]                                        # padded = -1e30

    # layer 1 (fused concat already in x): Linear + ReLU
    h1 = jnp.dot(x, w1, preferred_element_type=jnp.float32) + b1
    h1 = jnp.maximum(h1, 0.0)                                 # [TB, HP] f32

    # layer 2: Linear + ReLU
    h2 = jnp.dot(h1.astype(jnp.bfloat16), w2,
                 preferred_element_type=jnp.float32) + b2
    h2 = jnp.maximum(h2, 0.0)

    # head: logits (padded lanes == -1e30 via b3 padding)
    logits = jnp.dot(h2.astype(jnp.bfloat16), w3,
                     preferred_element_type=jnp.float32) + b3

    # Categorical(logits) -> log-probs; padded lanes contribute exp(-1e30-m)=0
    m = jnp.max(logits, axis=-1, keepdims=True)
    lse = m + jnp.log(jnp.sum(jnp.exp(logits - m), axis=-1, keepdims=True))

    # single lane-dense store: log_probs everywhere, lse stashed in lane A
    lane = jax.lax.broadcasted_iota(jnp.int32, logits.shape, 1)
    out_ref[...] = jnp.where(lane == A, lse, logits - lse)


# ---------------------------- parameter packing ------------------------------
def pack_params(params):
    """Pack torch-style f32 params into (bf16 weight slab, f32 bias slab)."""
    W1, b1 = params["W1"], params["b1"]        # [D, H], [H]   D = state_dim
    W2, b2 = params["W2"], params["b2"]        # [H, H], [H]
    W3, b3 = params["W3"], params["b3"]        # [H, A], [A]
    D, H = W1.shape
    A = W3.shape[1]
    HP = max(128, _round_up(max(H, A), 128))    # padded lane width
    assert A < HP, "need >=1 spare lane to stash the logsumexp in the output"
    DP = _round_up(D, 16)                       # bf16 sublane-tile aligned W1
    rows = DP + 2 * HP

    wslab = jnp.zeros((rows, HP), jnp.float32)
    wslab = wslab.at[0:D, 0:H].set(W1)
    wslab = wslab.at[DP:DP + H, 0:H].set(W2)
    wslab = wslab.at[DP + HP:DP + HP + H, 0:A].set(W3)
    wslab = wslab.astype(jnp.bfloat16)

    bslab = jnp.zeros((3, HP), jnp.float32)
    bslab = bslab.at[0, 0:H].set(b1)
    bslab = bslab.at[1, 0:H].set(b2)
    bslab = bslab.at[2, 0:A].set(b3)
    bslab = bslab.at[2, A:].set(-1e30)          # mask padded logit lanes

    meta = dict(D=D, DP=DP, H=H, A=A, HP=HP, rows=rows)
    return wslab, bslab, meta


# -------------------------------- wrapper -------------------------------------
def build_hca_forward(meta, tile_b=1024):
    """Returns jitted forward(states, returns, wslab, bslab) -> (logits, logp)."""
    D, DP, H, A, HP, rows = (meta[k] for k in ("D", "DP", "H", "A", "HP", "rows"))
    kern = partial(_hca_mlp_kernel, DP=DP, HP=HP, A=A)

    @jax.jit
    def forward(states, returns, wslab, bslab):
        B = states.shape[0]
        # Fuse the module's concat([states, returns]) with the bf16 cast (and
        # the padding below) into one XLA prologue feeding the kernel.
        x = jnp.concatenate(
            [states.astype(jnp.float32),
             returns.astype(jnp.float32).reshape(B, 1)], axis=-1)
        x = x.astype(jnp.bfloat16)                           # [B, D] bf16

        # Balanced, low-waste tile selection (multiple of 8 rows); give v7x's
        # two TensorCores >= 2 grid steps once the batch is large enough.
        n_tiles = _cdiv(B, tile_b)
        if n_tiles == 1 and B >= 1024:
            n_tiles = 2
        TB = _round_up(_cdiv(B, n_tiles), 8)
        grid = _cdiv(B, TB)
        Bp = grid * TB

        x = jnp.pad(x, ((0, Bp - B), (0, DP - D)))           # [Bp, DP] bf16

        cost = pl.CostEstimate(
            flops=2 * Bp * (D * H + H * H + H * A),
            transcendentals=Bp * (HP + 1),
            bytes_accessed=(Bp * DP * 2 + rows * HP * 2 + 3 * HP * 4
                            + Bp * HP * 4),
        )

        out = pl.pallas_call(
            kern,
            out_shape=jax.ShapeDtypeStruct((Bp, HP), jnp.float32),
            grid=(grid,),
            in_specs=[
                pl.BlockSpec((TB, DP), lambda i: (i, 0)),     # input tile
                pl.BlockSpec((rows, HP), lambda i: (0, 0)),   # resident weights
                pl.BlockSpec((3, HP), lambda i: (0, 0)),      # resident biases
            ],
            out_specs=pl.BlockSpec((TB, HP), lambda i: (i, 0)),
            compiler_params=pltpu.CompilerParams(
                dimension_semantics=("parallel",),
                # only needed for very large tiles (v5e 16 MiB scoped default)
                vmem_limit_bytes=(48 << 20) if TB > 2048 else None),
            cost_estimate=cost,
        )(x, wslab, bslab)

        log_probs = out[:B, :A]
        lse = out[:B, A:A + 1]
        logits = log_probs + lse
        return logits, log_probs

    return forward


# -------------------------- deterministic parameters --------------------------
def init_params(state_dim, hidden_size, action_dim, key):
    """Mimic torch.nn.Linear default init: U(-1/sqrt(fan_in), 1/sqrt(fan_in))."""
    ks = jax.random.split(key, 6)

    def linear(kw, kb, fan_in, fan_out):
        bound = 1.0 / (fan_in ** 0.5)
        W = jax.random.uniform(kw, (fan_in, fan_out), jnp.float32, -bound, bound)
        b = jax.random.uniform(kb, (fan_out,), jnp.float32, -bound, bound)
        return W, b

    W1, b1 = linear(ks[0], ks[1], state_dim, hidden_size)
    W2, b2 = linear(ks[2], ks[3], hidden_size, hidden_size)
    W3, b3 = linear(ks[4], ks[5], hidden_size, action_dim)
    return {"W1": W1, "b1": b1, "W2": W2, "b2": b2, "W3": W3, "b3": b3}


# ---------------------------- pure-JAX reference ------------------------------
def ref_forward(states, returns, params):
    """Reference MLP with the same bf16-weight / f32-accumulate precision."""
    W1, b1 = params["W1"], params["b1"]
    W2, b2 = params["W2"], params["b2"]
    W3, b3 = params["W3"], params["b3"]
    B = states.shape[0]
    x = jnp.concatenate([states, returns.reshape(B, 1)], axis=-1)
    x = x.astype(jnp.bfloat16)
    h1 = jnp.maximum(jnp.dot(x, W1.astype(jnp.bfloat16),
                             preferred_element_type=jnp.float32) + b1[None, :], 0.0)
    h2 = jnp.maximum(jnp.dot(h1.astype(jnp.bfloat16), W2.astype(jnp.bfloat16),
                             preferred_element_type=jnp.float32) + b2[None, :], 0.0)
    logits = jnp.dot(h2.astype(jnp.bfloat16), W3.astype(jnp.bfloat16),
                     preferred_element_type=jnp.float32) + b3[None, :]
    return logits, jax.nn.log_softmax(logits, axis=-1)


# --------------------------------- driver -------------------------------------
if __name__ == "__main__":
    # small shapes: batch=64 (module default batch_size), 32 state features
    # (+1 return => net input dim 33), hidden=64 (module default), 6 actions.
    B = 64
    STATE_FEATURES = 32
    STATE_DIM = STATE_FEATURES + 1     # net input dim = states ++ returns
    HIDDEN = 64
    ACTION_DIM = 6

    key = jax.random.PRNGKey(0)
    k_par, k_s, k_r = jax.random.split(key, 3)

    params = init_params(STATE_DIM, HIDDEN, ACTION_DIM, k_par)
    wslab, bslab, meta = pack_params(params)
    hca_forward = build_hca_forward(meta)

    states = jax.random.normal(k_s, (B, STATE_FEATURES), jnp.float32)
    returns = jax.random.normal(k_r, (B, 1), jnp.float32)

    logits, log_probs = hca_forward(states, returns, wslab, bslab)
    jax.block_until_ready((logits, log_probs))

    # sanity: shapes, probs sum to 1, and agreement with a pure-JAX reference
    assert logits.shape == (B, ACTION_DIM)
    assert log_probs.shape == (B, ACTION_DIM)
    probs_sum = jnp.sum(jnp.exp(log_probs), axis=-1)
    assert bool(jnp.all(jnp.abs(probs_sum - 1.0) < 1e-4))

    ref_logits, ref_logp = ref_forward(states, returns, params)
    assert bool(jnp.allclose(logits, ref_logits, atol=1e-2, rtol=1e-2))
    assert bool(jnp.allclose(log_probs, ref_logp, atol=1e-2, rtol=1e-2))

    # TODO(synk): CNN branch (cnn_base is not None), dropout, Gaussian noise
    # injection, input normalization (identity at default config), Categorical
    # sampling, and the continuous MultivariateNormal head are not exercised
    # by the default config and are not implemented here.
    print("KERNEL_OK")
</pallas_src>

<mosaic_0001>
module attributes {stable_mosaic.version = 11 : i64} {
  func.func @_hca_mlp_kernel(%arg0: i32, %arg1: memref<64x48xbf16, #tpu.memory_space<vmem>>, %arg2: memref<304x128xbf16, #tpu.memory_space<vmem>>, %arg3: memref<3x128xf32, #tpu.memory_space<vmem>>, %arg4: memref<64x128xf32, #tpu.memory_space<vmem>>) attributes {dimension_semantics = [#tpu.dimension_semantics<parallel>], iteration_bounds = array<i64: 1>, scalar_prefetch = 0 : i64, scratch_operands = 0 : i64, tpu.core_type = #tpu.core_type<tc>, window_params = [{transform_indices = @transform_0, window_bounds = array<i64: 64, 48>}, {pipeline_mode = #tpu.pipeline_mode<synchronous>, transform_indices = @transform_1, window_bounds = array<i64: 304, 128>}, {pipeline_mode = #tpu.pipeline_mode<synchronous>, transform_indices = @transform_2, window_bounds = array<i64: 3, 128>}, {transform_indices = @transform_3, window_bounds = array<i64: 64, 128>}]} {
    %c0 = arith.constant 0 : index
    %c0_0 = arith.constant 0 : index
    %0 = vector.load %arg1[%c0, %c0_0] : memref<64x48xbf16, #tpu.memory_space<vmem>>, vector<64x48xbf16>
    %c0_1 = arith.constant 0 : index
    %c0_2 = arith.constant 0 : index
    %1 = vector.load %arg2[%c0_1, %c0_2] : memref<304x128xbf16, #tpu.memory_space<vmem>>, vector<48x128xbf16>
    %c48 = arith.constant 48 : index
    %c0_3 = arith.constant 0 : index
    %2 = vector.load %arg2[%c48, %c0_3] : memref<304x128xbf16, #tpu.memory_space<vmem>>, vector<128x128xbf16>
    %c176 = arith.constant 176 : index
    %c0_4 = arith.constant 0 : index
    %3 = vector.load %arg2[%c176, %c0_4] : memref<304x128xbf16, #tpu.memory_space<vmem>>, vector<128x128xbf16>
    %c0_5 = arith.constant 0 : index
    %c0_6 = arith.constant 0 : index
    %4 = vector.load %arg3[%c0_5, %c0_6] : memref<3x128xf32, #tpu.memory_space<vmem>>, vector<1x128xf32>
    %c1 = arith.constant 1 : index
    %c0_7 = arith.constant 0 : index
    %5 = vector.load %arg3[%c1, %c0_7] : memref<3x128xf32, #tpu.memory_space<vmem>>, vector<1x128xf32>
    %c2 = arith.constant 2 : index
    %c0_8 = arith.constant 0 : index
    %6 = vector.load %arg3[%c2, %c0_8] : memref<3x128xf32, #tpu.memory_space<vmem>>, vector<1x128xf32>
    %cst = arith.constant dense<0.000000e+00> : vector<64x128xf32>
    %7 = tpu.matmul %0, %1, %cst {dimension_numbers = #tpu.dot_dimension_numbers<[1], [0], [0], [1], [0, 0, 1, 1], [], []>} : vector<64x48xbf16>, vector<48x128xbf16>, vector<64x128xf32> -> vector<64x128xf32>
    %8 = vector.broadcast %4 : vector<1x128xf32> to vector<64x128xf32>
    %9 = arith.addf %7, %8 : vector<64x128xf32>
    %cst_9 = arith.constant 0.000000e+00 : f32
    %10 = vector.broadcast %cst_9 : f32 to vector<64x128xf32>
    %11 = arith.maximumf %9, %10 : vector<64x128xf32>
    %12 = arith.truncf %11 : vector<64x128xf32> to vector<64x128xbf16>
    %cst_10 = arith.constant dense<0.000000e+00> : vector<64x128xf32>
    %13 = tpu.matmul %12, %2, %cst_10 {dimension_numbers = #tpu.dot_dimension_numbers<[1], [0], [0], [1], [0, 0, 1, 1], [], []>} : vector<64x128xbf16>, vector<128x128xbf16>, vector<64x128xf32> -> vector<64x128xf32>
    %14 = vector.broadcast %5 : vector<1x128xf32> to vector<64x128xf32>
    %15 = arith.addf %13, %14 : vector<64x128xf32>
    %cst_11 = arith.constant 0.000000e+00 : f32
    %16 = vector.broadcast %cst_11 : f32 to vector<64x128xf32>
    %17 = arith.maximumf %15, %16 : vector<64x128xf32>
    %18 = arith.truncf %17 : vector<64x128xf32> to vector<64x128xbf16>
    %cst_12 = arith.constant dense<0.000000e+00> : vector<64x128xf32>
    %19 = tpu.matmul %18, %3, %cst_12 {dimension_numbers = #tpu.dot_dimension_numbers<[1], [0], [0], [1], [0, 0, 1, 1], [], []>} : vector<64x128xbf16>, vector<128x128xbf16>, vector<64x128xf32> -> vector<64x128xf32>
    %20 = vector.broadcast %6 : vector<1x128xf32> to vector<64x128xf32>
    %21 = arith.addf %19, %20 : vector<64x128xf32>
    %cst_13 = arith.constant dense<0xFF800000> : vector<64xf32>
    %22 = vector.multi_reduction <maximumf>, %21, %cst_13 [1] : vector<64x128xf32> to vector<64xf32>
    %23 = vector.shape_cast %22 : vector<64xf32> to vector<64x1xf32>
    %24 = vector.broadcast %23 : vector<64x1xf32> to vector<64x128xf32>
    %25 = arith.subf %21, %24 : vector<64x128xf32>
    %26 = math.exp %25 : vector<64x128xf32>
    %cst_14 = arith.constant dense<0.000000e+00> : vector<64xf32>
    %27 = vector.multi_reduction <add>, %26, %cst_14 [1] : vector<64x128xf32> to vector<64xf32>
    %28 = vector.shape_cast %27 : vector<64xf32> to vector<64x1xf32>
    %29 = math.log %28 : vector<64x1xf32>
    %30 = arith.addf %23, %29 : vector<64x1xf32>
    %31 = tpu.iota {dimensions = array<i32: 1>} : vector<64x128xi32>
    %c6_i32 = arith.constant 6 : i32
    %32 = vector.broadcast %c6_i32 : i32 to vector<64x128xi32>
    %33 = arith.cmpi eq, %31, %32 : vector<64x128xi32>
    %34 = vector.broadcast %30 : vector<64x1xf32> to vector<64x128xf32>
    %35 = arith.subf %21, %34 : vector<64x128xf32>
    %36 = vector.shape_cast %30 : vector<64x1xf32> to vector<64x1xf32>
    %37 = vector.broadcast %36 : vector<64x1xf32> to vector<64x128xf32>
    %38 = arith.select %33, %37, %35 : vector<64x128xi1>, vector<64x128xf32>
    %c0_15 = arith.constant 0 : index
    %c0_16 = arith.constant 0 : index
    %39 = vector.load %arg4[%c0_15, %c0_16] : memref<64x128xf32, #tpu.memory_space<vmem>>, vector<64x128xf32>
    tpu.vector_store %arg4[%c0_15, %c0_16], %38 {strides = array<i32>} : memref<64x128xf32, #tpu.memory_space<vmem>>, vector<64x128xf32>,
    return
  }
  func.func @transform_0(%arg0: i32) -> (i32, i32) {
    %c0_i32 = arith.constant 0 : i32
    %c0_i32_0 = arith.constant 0 : i32
    return %arg0, %c0_i32 : i32, i32
  }
  func.func @transform_1(%arg0: i32) -> (i32, i32) {
    %c0_i32 = arith.constant 0 : i32
    %c0_i32_0 = arith.constant 0 : i32
    %c0_i32_1 = arith.constant 0 : i32
    return %c0_i32, %c0_i32_0 : i32, i32
  }
  func.func @transform_2(%arg0: i32) -> (i32, i32) {
    %c0_i32 = arith.constant 0 : i32
    %c0_i32_0 = arith.constant 0 : i32
    %c0_i32_1 = arith.constant 0 : i32
    return %c0_i32, %c0_i32_0 : i32, i32
  }
  func.func @transform_3(%arg0: i32) -> (i32, i32) {
    %c0_i32 = arith.constant 0 : i32
    %c0_i32_0 = arith.constant 0 : i32
    return %arg0, %c0_i32 : i32, i32
  }
}

</mosaic_0001>

<bundles_post_ra>
// kernel: forward.1
= control target key start
LH: loop header
LB: loop body
LE: loop exit
PB: predicated region body
PF: predicated region fallthrough
CT: control target
= control target key end

     0   :  { %vm106_vm0 = vcmask 392192   ;;  %s937_s1 = inlined_call_operand.vmem [shape: bf16[304,128], index: 1, kind: input, shape index: {}]   ;;  %s938_s0 = inlined_call_operand.vmem [shape: bf16[64,48], index: 0, kind: input, shape index: {}]   ;;  %s939_s2 = inlined_call_operand.vmem [shape: f32[3,128], index: 2, kind: input, shape index: {}]   ;;  %s940_s3 = inlined_call_operand.vmem [shape: f32[64,128], index: 3, kind: output, shape index: {}]  }
   0x1   :  { %v676_v0 = vld [vmem:[%s937_s1] sm:$0xff]   ;;  %v677_v1 = vld [vmem:[%s937_s1 + $0x8] sm:$0xff]   ;;  %v678_v3 = vld [vmem:[%s937_s1 + $0x10] sm:$0xff]  }
   0x2   :  { %614 = vmatprep.subr.bf16.mxu0 %v676_v0  ;;  %v679_v2 = vld [vmem:[%s938_s0] sm:$0xff]   ;;  %v683_v4 = vld [vmem:[%s937_s1 + $0x18] sm:$0xff]   ;;  %v680_v6 = vld [vmem:[%s938_s0 + $0x8] sm:$0xff]  }
   0x3   :  { %615 = vmatpush3.bf16.msra.mxu0 %v676_v0  ;;  %620 = vmatprep.mubr.msk.bf16.mxu0 %vm106_vm0, %v679_v2  ;;  %v684_v5 = vld [vmem:[%s937_s1 + $0x20] sm:$0xff]   ;;  %v681_v7 = vld [vmem:[%s938_s0 + $0x10] sm:$0xff]   ;;  %v685_v8 = vld [vmem:[%s937_s1 + $0x28] sm:$0xff]  }
   0x4   :  { %616 = vmatprep.subr.bf16.mxu0 %v677_v1  ;;  %628 = vmatprep.subr.bf16.mxu1 %v683_v4  ;;  %v686_v9 = vld [vmem:[%s937_s1 + $0x30] sm:$0xff]   ;;  %v682_v10 = vld [vmem:[%s938_s0 + $0x18] sm:$0xff]   ;;  %v688_v12 = vld [vmem:[%s937_s1 + $0x40] sm:$0xff]  }
   0x5   :  { %629 = vmatpush3.bf16.msra.mxu1 %v683_v4  ;;  %v687_v11 = vld [vmem:[%s937_s1 + $0x38] sm:$0xff]   ;;  %v689_v13 = vld [vmem:[%s937_s1 + $0x48] sm:$0xff]   ;;  %v690_v14 = vld [vmem:[%s937_s1 + $0x50] sm:$0xff]  }
   0x6   :  { %630 = vmatprep.subr.bf16.mxu1 %v684_v5  ;;  %v691_v15 = vld [vmem:[%s937_s1 + $0x58] sm:$0xff]   ;;  %v692_v16 = vld [vmem:[%s937_s1 + $0x60] sm:$0xff]   ;;  %v693_v17 = vld [vmem:[%s937_s1 + $0x68] sm:$0xff]  }
   0x7   :  { %617 = vmatpush3.bf16.msra.mxu0 %v677_v1  ;;  %v694_v18 = vld [vmem:[%s937_s1 + $0x70] sm:$0xff]   ;;  %v695_v19 = vld [vmem:[%s937_s1 + $0x78] sm:$0xff]   ;;  %v696_v20 = vld [vmem:[%s937_s1 + $0x80] sm:$0xff]  }
   0x8   :  { %618 = vmatprep.subr.bf16.mxu0 %v678_v3  ;;  %v553_v21 = vld [vmem:[%s939_s2] ss:$0 sm:$0xff]  ;;  %v697_v50 = vld [vmem:[%s937_s1 + $0x88] sm:$0xff]   ;;  %v698_v51 = vld [vmem:[%s937_s1 + $0x90] sm:$0xff]  }
   0x9   :  { %631 = vmatpush3.bf16.msra.mxu1 %v684_v5  ;;  %v565_v52 = vld [vmem:[%s939_s2 + $0x1] ss:$0 sm:$0xff] }
   0xa   :  { %632 = vmatprep.subr.bf16.mxu1 %v685_v8 }
   0xb   :  { %619 = vmatpush3.bf16.msra.mxu0 %v678_v3 }
   0xc   :  { %652 = vmatprep.subr.bf16.mxu0 %v691_v15 }
   0xd   :  { %633 = vmatpush3.bf16.msra.mxu1 %v685_v8 }
   0xe   :  { %621 = vmatmul.mubr.msk.bf16.vlgmr.msra.gmra.mrb[0].mxu0 %vm106_vm0, %v680_v6  ;;  %634 = vmatprep.subr.bf16.mxu1 %v686_v9 }
   0xf   :  { %624 = vmatprep.mubr.msk.bf16.mxu0 %vm106_vm0, %v681_v7  ;;  %653 = vmatpush3.bf16.msra.mxu0 %v691_v15 }
  0x10   :  { %654 = vmatprep.subr.bf16.mxu0 %v692_v16 }
  0x11   :  { %635 = vmatpush3.bf16.msra.mxu1 %v686_v9 }
  0x12   :  { %636 = vmatprep.subr.bf16.mxu1 %v687_v11 }
  0x13   :  { %655 = vmatpush3.bf16.msra.mxu0 %v692_v16 }
  0x14   :  { %656 = vmatprep.subr.bf16.mxu0 %v693_v17 }
  0x15   :  { %637 = vmatpush3.bf16.msra.mxu1 %v687_v11 }
  0x16   :  { %625 = vmatmul.mubr.msk.bf16.gmra.mrb[4].mxu0 %vm106_vm0, %v682_v10  ;;  %638 = vmatprep.subr.bf16.mxu1 %v688_v12 }
  0x17   :  { %657 = vmatpush3.bf16.msra.mxu0 %v693_v17  ;;  %v574_v17 = vld [vmem:[%s939_s2 + $0x2] ss:$0 sm:$0xff] }
  0x18   :  { %658 = vmatprep.subr.bf16.mxu0 %v694_v18 }
  0x19   :  { %639 = vmatpush3.bf16.msra.mxu1 %v688_v12 }
  0x1a   :  { %640 = vmatprep.subr.bf16.mxu1 %v689_v13 }
  0x1b   :  { %659 = vmatpush3.bf16.msra.mxu0 %v694_v18 }
  0x1c   :  { %660 = vmatprep.subr.bf16.mxu0 %v695_v19 }
  0x1d   :  { %641 = vmatpush3.bf16.msra.mxu1 %v689_v13 }
  0x1e   :  { %642 = vmatprep.subr.bf16.mxu1 %v690_v14 }
  0x1f   :  { %661 = vmatpush3.bf16.msra.mxu0 %v695_v19 }
  0x20   :  { %662 = vmatprep.subr.bf16.mxu0 %v696_v20 }
  0x21   :  { %643 = vmatpush3.bf16.msra.mxu1 %v690_v14 }
  0x23   :  { %663 = vmatpush3.bf16.msra.mxu0 %v696_v20 }
  0x24   :  { %664 = vmatprep.subr.bf16.mxu0 %v697_v50 }
  0x27   :  { %665 = vmatpush3.bf16.msra.mxu0 %v697_v50 }
  0x28   :  { %666 = vmatprep.subr.bf16.mxu0 %v698_v51 }
  0x2b   :  { %667 = vmatpush3.bf16.msra.mxu0 %v698_v51 }
  0xe1   :  { %v622_v22 = vpop.f32.mrb[0].mxu0 }
  0xe2   :  { %v162_v23 = vadd.f32 %v622_v22, %v553_v21  ;;  %v153_v24 = vpop.f32.mrb[1].mxu0 }
  0xe3   :  { %v154_v25 = vadd.f32 %v553_v21, %v153_v24  ;;  %v623_v26 = vpop.f32.mrb[2].mxu0 }
  0xe4   :  { %v165_v27 = vadd.f32 %v623_v26, %v553_v21  ;;  %v156_v28 = vpop.f32.mrb[3].mxu0  ;;  %v186_v30 = vmax.f32 %v162_v23, 0.0 }
  0xe5   :  { %v157_v29 = vadd.f32 %v553_v21, %v156_v28  ;;  %v184_v32 = vmax.f32 %v154_v25, 0.0 }
  0xe6   :  { %v187_v31 = vmax.f32 %v165_v27, 0.0 }
  0xe7   :  { %v185_v33 = vmax.f32 %v157_v29, 0.0 }
  0xe8   :  { %v193_v34 = vpack.c.bf16 %v187_v31, %v186_v30 }
  0xe9   :  { %v626_v35 = vpop.f32.mrb[4].mxu0  ;;  %v192_v36 = vpack.c.bf16 %v185_v33, %v184_v32 }
  0xea   :  { %v178_v37 = vadd.f32 %v626_v35, %v553_v21  ;;  %v169_v38 = vpop.f32.mrb[5].mxu0 }
  0xeb   :  { %v170_v39 = vadd.f32 %v553_v21, %v169_v38  ;;  %v627_v40 = vpop.f32.mrb[6].mxu0  ;;  %644 = vmatprep.mubr.bf16.mxu1 %v192_v36 }
  0xec   :  { %v190_v41 = vmax.f32 %v178_v37, 0.0  ;;  %v181_v42 = vadd.f32 %v627_v40, %v553_v21  ;;  %v172_v43 = vpop.f32.mrb[7].mxu0  ;;  %645 = vmatmul.mubr.bf16.vlgmr.msra.gmra.mrb[0].mxu1 %v193_v34 }
  0xed   :  { %v173_v44 = vadd.f32 %v553_v21, %v172_v43  ;;  %v188_v46 = vmax.f32 %v170_v39, 0.0 }
  0xee   :  { %v191_v45 = vmax.f32 %v181_v42, 0.0 }
  0xef   :  { %v189_v47 = vmax.f32 %v173_v44, 0.0 }
  0xf0   :  { %v195_v48 = vpack.c.bf16 %v191_v45, %v190_v41 }
  0xf1   :  { %v194_v49 = vpack.c.bf16 %v189_v47, %v188_v46 }
  0xf3   :  { %648 = vmatprep.mubr.bf16.mxu1 %v194_v49 }
  0xf4   :  { %649 = vmatmul.mubr.bf16.gmra.mrb[4].mxu1 %v195_v48 }
 0x1bf   :  { %v646_v53 = vpop.f32.mrb[0].mxu1 }
 0x1c0   :  { %v291_v54 = vadd.f32 %v646_v53, %v565_v52  ;;  %v282_v55 = vpop.f32.mrb[1].mxu1 }
 0x1c1   :  { %v283_v56 = vadd.f32 %v565_v52, %v282_v55  ;;  %v647_v57 = vpop.f32.mrb[2].mxu1 }
 0x1c2   :  { %v294_v58 = vadd.f32 %v647_v57, %v565_v52  ;;  %v285_v59 = vpop.f32.mrb[3].mxu1  ;;  %v315_v61 = vmax.f32 %v291_v54, 0.0 }
 0x1c3   :  { %v286_v60 = vadd.f32 %v565_v52, %v285_v59  ;;  %v313_v63 = vmax.f32 %v283_v56, 0.0 }
 0x1c4   :  { %v316_v62 = vmax.f32 %v294_v58, 0.0 }
 0x1c5   :  { %v314_v0 = vmax.f32 %v286_v60, 0.0 }
 0x1c6   :  { %v322_v1 = vpack.c.bf16 %v316_v62, %v315_v61 }
 0x1c7   :  { %v321_v2 = vpack.c.bf16 %v314_v0, %v313_v63  ;;  %v650_v3 = vpop.f32.mrb[4].mxu1 }
 0x1c8   :  { %v307_v4 = vadd.f32 %v650_v3, %v565_v52  ;;  %v298_v5 = vpop.f32.mrb[5].mxu1 }
 0x1c9   :  { %v299_v6 = vadd.f32 %v565_v52, %v298_v5  ;;  %v651_v7 = vpop.f32.mrb[6].mxu1  ;;  %668 = vmatprep.mubr.bf16.mxu0 %v321_v2  ;;  %v522_v5 = vlaneseq }
 0x1ca   :  { %v310_v8 = vadd.f32 %v651_v7, %v565_v52  ;;  %v301_v9 = vpop.f32.mrb[7].mxu1  ;;  %669 = vmatmul.mubr.bf16.vlgmr.msra.gmra.mrb[8].mxu0 %v322_v1  ;;  %v319_v11 = vmax.f32 %v307_v4, 0.0 }
 0x1cb   :  { %v302_v10 = vadd.f32 %v565_v52, %v301_v9  ;;  %v317_v13 = vmax.f32 %v299_v6, 0.0  ;;  %v523_v9 = vand.u32 127, %v522_v5 }
 0x1cc   :  { %v320_v12 = vmax.f32 %v310_v8, 0.0 }
 0x1cd   :  { %v318_v14 = vmax.f32 %v302_v10, 0.0  ;;  %vm524_vm1 = vcmp.eq.s32.totalorder %v523_v9, 6 }
 0x1ce   :  { %v324_v15 = vpack.c.bf16 %v320_v12, %v319_v11 }
 0x1cf   :  { %v323_v16 = vpack.c.bf16 %v318_v14, %v317_v13 }
 0x1d1   :  { %672 = vmatprep.mubr.bf16.mxu0 %v323_v16 }
 0x1d2   :  { %673 = vmatmul.mubr.bf16.gmra.mrb[12].mxu0 %v324_v15 }
 0x29d   :  { %v670_v18 = vpop.f32.mrb[8].mxu0 }
 0x29e   :  { %v833_v19 = vadd.f32 %v670_v18, %v574_v17  ;;  %v411_v20 = vpop.f32.mrb[9].mxu0 }
 0x29f   :  { %v835_v21 = vadd.f32 %v574_v17, %v411_v20  ;;  %v671_v22 = vpop.f32.mrb[10].mxu0 }
 0x2a0   :  { %446 = vmax.xlane.f32.xlu1 %v833_v19  ;;  %v414_v23 = vpop.f32.mrb[11].mxu0  ;;  %v839_v24 = vadd.f32 %v671_v22, %v574_v17 }
 0x2a1   :  { %442 = vmax.xlane.f32.xlu0 %v835_v21  ;;  %v841_v25 = vadd.f32 %v574_v17, %v414_v23 }
 0x2a4   :  { %448 = vmax.xlane.f32.xlu1 %v839_v24 }
 0x2a5   :  { %v674_v26 = vpop.f32.mrb[12].mxu0  ;;  %444 = vmax.xlane.f32.xlu0 %v841_v25 }
 0x2a6   :  { %v427_v27 = vpop.f32.mrb[13].mxu0  ;;  %v850_v32 = vadd.f32 %v674_v26, %v574_v17 }
 0x2a7   :  { %v845_v28 = vadd.f32 %v574_v17, %v427_v27  ;;  %v675_v29 = vpop.f32.mrb[14].mxu0 }
 0x2a8   :  { %v430_v30 = vpop.f32.mrb[15].mxu0  ;;  %v853_v33 = vadd.f32 %v675_v29, %v574_v17 }
 0x2a9   :  { %v847_v31 = vadd.f32 %v574_v17, %v430_v30  ;;  %450 = vmax.xlane.f32.xlu0 %v845_v28 }
 0x2ab   :  { %452 = vmax.xlane.f32.xlu1 %v847_v31 }
 0x2ad   :  { %454 = vmax.xlane.f32.xlu0 %v850_v32 }
 0x2af   :  { %456 = vmax.xlane.f32.xlu1 %v853_v33 }
 0x32d   :  { %v857_v34 = vpop.xlane.xlu1 %446 }
 0x32e   :  { %v460_v35 = vsub.f32 %v833_v19, %v857_v34  ;;  %v861_v36 = vpop.xlane.xlu0 %442 }
 0x32f   :  { %v458_v37 = vsub.f32 %v835_v21, %v861_v36 }
 0x330   :  { %v470_v38 = vmul.f32 1.442695, %v460_v35 }
 0x331   :  { %v466_v39 = vmul.f32 1.442695, %v458_v37  ;;  %v865_v40 = vpop.xlane.xlu1 %448 }
 0x332   :  { %699 = vpow2.f32 %v470_v38  ;;  %v461_v41 = vsub.f32 %v839_v24, %v865_v40  ;;  %v869_v42 = vpop.xlane.xlu0 %444 }
 0x333   :  { %v459_v43 = vsub.f32 %v841_v25, %v869_v42  ;;  %701 = vpow2.f32 %v466_v39 }
 0x334   :  { %v472_v44 = vmul.f32 1.442695, %v461_v41 }
 0x335   :  { %v468_v45 = vmul.f32 1.442695, %v459_v43 }
 0x336   :  { %703 = vpow2.f32 %v472_v44  ;;  %v873_v46 = vpop.xlane.xlu0 %450 }
 0x337   :  { %v462_v47 = vsub.f32 %v845_v28, %v873_v46  ;;  %705 = vpow2.f32 %v468_v45 }
 0x338   :  { %v877_v48 = vpop.xlane.xlu1 %452 }
 0x339   :  { %v474_v49 = vmul.f32 1.442695, %v462_v47  ;;  %v463_v50 = vsub.f32 %v847_v31, %v877_v48 }
 0x33a   :  { %v881_v51 = vpop.xlane.xlu0 %454 }
 0x33b   :  { %707 = vpow2.f32 %v474_v49  ;;  %v476_v52 = vmul.f32 1.442695, %v463_v50  ;;  %v464_v53 = vsub.f32 %v850_v32, %v881_v51 }
 0x33c   :  { %v700_v54 = vpop.eup %699  ;;  %v885_v55 = vpop.xlane.xlu1 %456 }
 0x33d   :  { %709 = vpow2.f32 %v476_v52  ;;  %v478_v56 = vmul.f32 1.442695, %v464_v53  ;;  %v465_v57 = vsub.f32 %v853_v33, %v885_v55  ;;  %486 = vadd.xlane.f32.xlu0 %v700_v54  ;;  %v702_v58 = vpop.eup %701 }
 0x33f   :  { %711 = vpow2.f32 %v478_v56  ;;  %v480_v59 = vmul.f32 1.442695, %v465_v57 }
 0x340   :  { %v704_v60 = vpop.eup %703 }
 0x341   :  { %713 = vpow2.f32 %v480_v59  ;;  %488 = vadd.xlane.f32.xlu1 %v704_v60  ;;  %482 = vadd.xlane.f32.xlu0 %v702_v58  ;;  %v706_v61 = vpop.eup %705 }
 0x345   :  { %v708_v62 = vpop.eup %707  ;;  %484 = vadd.xlane.f32.xlu1 %v706_v61 }
 0x346   :  { %490 = vadd.xlane.f32.xlu0 %v708_v62 }
 0x347   :  { %v710_v63 = vpop.eup %709 }
 0x349   :  { %v712_v0 = vpop.eup %711  ;;  %492 = vadd.xlane.f32.xlu1 %v710_v63 }
 0x34a   :  { %494 = vadd.xlane.f32.xlu0 %v712_v0 }
 0x34b   :  { %v714_v1 = vpop.eup %713 }
 0x34d   :  { %496 = vadd.xlane.f32.xlu1 %v714_v1 }
 0x3ca   :  { %v487_v2 = vpop.xlane.xlu0 %486 }
 0x3cb   :  { %715 = vlog2.f32 %v487_v2 }
 0x3ce   :  { %v489_v3 = vpop.xlane.xlu1 %488  ;;  %v483_v4 = vpop.xlane.xlu0 %482 }
 0x3cf   :  { %717 = vlog2.f32 %v489_v3 }
 0x3d0   :  { %719 = vlog2.f32 %v483_v4 }
 0x3d2   :  { %v485_v6 = vpop.xlane.xlu1 %484 }
 0x3d3   :  { %721 = vlog2.f32 %v485_v6  ;;  %v491_v7 = vpop.xlane.xlu0 %490 }
 0x3d4   :  { %723 = vlog2.f32 %v491_v7 }
 0x3d5   :  { %v716_v8 = vpop.eup %715 }
 0x3d6   :  { %v503_v10 = vmul.f32 0.6931472, %v716_v8  ;;  %v493_v11 = vpop.xlane.xlu1 %492 }
 0x3d7   :  { %725 = vlog2.f32 %v493_v11  ;;  %v495_v12 = vpop.xlane.xlu0 %494 }
 0x3d8   :  { %v516_v13 = vadd.f32 %v503_v10, %v857_v34  ;;  %727 = vlog2.f32 %v495_v12 }
 0x3d9   :  { %v718_v14 = vpop.eup %717 }
 0x3da   :  { %v720_v15 = vpop.eup %719  ;;  %v527_v16 = vsub.f32 %v833_v19, %v516_v13  ;;  %v505_v17 = vmul.f32 0.6931472, %v718_v14  ;;  %v497_v18 = vpop.xlane.xlu1 %496 }
 0x3db   :  { %v499_v20 = vmul.f32 0.6931472, %v720_v15  ;;  %729 = vlog2.f32 %v497_v18 }
 0x3dc   :  { %v535_v22 = vsel %vm524_vm1, %v516_v13, %v527_v16  ;;  %v517_v23 = vadd.f32 %v505_v17, %v865_v40 }
 0x3dd   :  { %v722_v26 = vpop.eup %721  ;;  %543 = vst [vmem:[%s940_s3 + $0x10] sm:$0xff] %v535_v22  ;;  %v514_v27 = vadd.f32 %v499_v20, %v861_v36 }
 0x3de   :  { %v724_v29 = vpop.eup %723  ;;  %v528_v30 = vsub.f32 %v839_v24, %v517_v23  ;;  %v501_v34 = vmul.f32 0.6931472, %v722_v26 }
 0x3df   :  { %v525_v19 = vsub.f32 %v835_v21, %v514_v27  ;;  %v507_v35 = vmul.f32 0.6931472, %v724_v29 }
 0x3e0   :  { %v536_v37 = vsel %vm524_vm1, %v517_v23, %v528_v30  ;;  %v515_v38 = vadd.f32 %v501_v34, %v869_v42 }
 0x3e1   :  { %v726_v39 = vpop.eup %725  ;;  %544 = vst [vmem:[%s940_s3 + $0x18] sm:$0xff] %v536_v37  ;;  %v533_v40 = vsel %vm524_vm1, %v514_v27, %v525_v19  ;;  %v518_v36 = vadd.f32 %v507_v35, %v873_v46 }
 0x3e2   :  { %v728_v41 = vpop.eup %727  ;;  %541 = vst [vmem:[%s940_s3] sm:$0xff] %v533_v40  ;;  %v526_v21 = vsub.f32 %v841_v25, %v515_v38  ;;  %v509_v24 = vmul.f32 0.6931472, %v726_v39 }
 0x3e3   :  { %v529_v43 = vsub.f32 %v845_v28, %v518_v36  ;;  %v511_v42 = vmul.f32 0.6931472, %v728_v41 }
 0x3e4   :  { %v534_v44 = vsel %vm524_vm1, %v515_v38, %v526_v21  ;;  %v519_v45 = vadd.f32 %v509_v24, %v877_v48 }
 0x3e5   :  { %v730_v47 = vpop.eup %729  ;;  %542 = vst [vmem:[%s940_s3 + $0x8] sm:$0xff] %v534_v44  ;;  %v537_v46 = vsel %vm524_vm1, %v518_v36, %v529_v43  ;;  %v520_v49 = vadd.f32 %v511_v42, %v881_v51 }
 0x3e6   :  { %545 = vst [vmem:[%s940_s3 + $0x20] sm:$0xff] %v537_v46  ;;  %v530_v25 = vsub.f32 %v847_v31, %v519_v45  ;;  %v513_v28 = vmul.f32 0.6931472, %v730_v47 }
 0x3e7   :  { %v531_v50 = vsub.f32 %v850_v32, %v520_v49 }
 0x3e8   :  { %v538_v48 = vsel %vm524_vm1, %v519_v45, %v530_v25  ;;  %v521_v52 = vadd.f32 %v513_v28, %v885_v55 }
 0x3e9   :  { %546 = vst [vmem:[%s940_s3 + $0x28] sm:$0xff] %v538_v48  ;;  %v539_v53 = vsel %vm524_vm1, %v520_v49, %v531_v50 }
 0x3ea   :  { %547 = vst [vmem:[%s940_s3 + $0x30] sm:$0xff] %v539_v53  ;;  %v532_v51 = vsub.f32 %v853_v33, %v521_v52 }
 0x3ec   :  { %v540_v31 = vsel %vm524_vm1, %v521_v52, %v532_v51 }
 0x3ed   :  { %548 = vst [vmem:[%s940_s3 + $0x38] sm:$0xff] %v540_v31 }

</bundles_post_ra>
